<compile_context>
chip_gen: v7x
topology: tpu7x:2x2x1
jax: 0.10.0
libtpu: 0.0.40
codegen_flags: <defaults>
</compile_context>

<pallas_src>
import functools
import math

import jax
import jax.numpy as jnp
from jax.experimental import pallas as pl
from jax.experimental.pallas import tpu as pltpu

IN_F = 3
HID = 32
OUT_F = 3
HIDDEN_LAYERS = 3  # number of (Linear(H,H) + Tanh) blocks


def _nilut_kernel(x_ref, w1_ref, b1_ref, wh_ref, bh_ref, w5_ref, b5_ref, o_ref,
                  *, chunk, elem_dtype):
    """One grid step: a (3, TM) lane-dense tile of points through the full MLP.

    The tile is processed in `chunk`-lane slices (static Python loop, fully
    unrolled) so MXU pushes of the next slice can overlap the current slice's
    bias/ReLU/tanh/cast work, and per-slice activations stay in vregs.
    """
    tm = x_ref.shape[-1]
    n_chunks = tm // chunk
    cdt = w1_ref.dtype                                  # MXU operand dtype

    # Weights are tiny -> pin them in vregs across the whole tile.
    w1 = w1_ref[...]                                    # (32, 3)
    whs = [wh_ref[l] for l in range(HIDDEN_LAYERS)]     # each (32, 32)
    w5 = w5_ref[...]                                    # (3, 32)

    # NOTE: biases stay (·, 1); the per-chunk lane-broadcast is a handful of
    # VPU ops hidden under the MXU/EUP phases, whereas pre-broadcasting them to
    # (·, chunk) would pin ~36 vregs and push the kernel into spills.
    # TODO(synk): folding b1 into w1 via a ones-row (K=3->4) would need a
    # per-chunk sublane concat; skipped as the plain add is already hidden.
    for c in range(n_chunks):                           # static slices: free
        sl = pl.ds(c * chunk, chunk)
        x = x_ref[:, sl]                                # (3, chunk) f32, reused as residual

        # Linear(3 -> 32) + ReLU   (bf16 MXU operands, f32 accumulation)
        h = jnp.dot(w1, x.astype(cdt), preferred_element_type=jnp.float32)
        h = jnp.maximum(h.astype(elem_dtype) + b1_ref[...], 0.0)

        # 3 x (Linear(32 -> 32) + Tanh) — elementwise chain in elem_dtype (EUP)
        for l in range(HIDDEN_LAYERS):
            h = jnp.dot(whs[l], h.astype(cdt), preferred_element_type=jnp.float32)
            h = jnp.tanh(h.astype(elem_dtype) + bh_ref[l])

        # Linear(32 -> 3) + residual + clamp, all f32 (res=True branch).
        out = jnp.dot(w5, h.astype(cdt), preferred_element_type=jnp.float32)
        out = out + b5_ref[...] + x
        o_ref[:, sl] = jnp.clip(out, 0.0, 1.0).astype(o_ref.dtype)


def _device_kind():
    try:
        return jax.devices()[0].device_kind.lower()
    except Exception:
        return ""


def _round_up(a, b):
    return -(-a // b) * b


def _choose_tiles(m, tm_req, chunk_req, batch, kind):
    """Pick (tm, chunk).  tm = points per grid step (lane axis); chunk = lanes
    per in-kernel pipeline slice.  Only v7x has 2 TensorCores sharing the
    parallel grid axes, so only there is tm shrunk to expose >= 4 parallel
    steps; on v5e/v6e shrinking only adds per-step overhead."""
    is_v7x = ("v7" in kind) or ("7x" in kind)
    if m <= 256:
        tm = m                                          # single full-extent block
    else:
        tm = min(tm_req, (m // 256) * 256)              # stay <= m; ragged tail masked by Pallas
        if is_v7x:
            want_blocks = max(1, -(-4 // max(1, batch)))
            tm = min(tm, max(256, _round_up(-(-m // want_blocks), 256)))
        tm = max(256, (tm // 256) * 256)
    if tm <= chunk_req:
        chunk = tm
    elif tm % chunk_req == 0:
        chunk = chunk_req
    else:
        chunk = 256
    return tm, chunk


def nilut_pallas(x, params, *, tm=8192, chunk=512,
                 mxu_dtype=jnp.bfloat16, elem_dtype=None):
    """NILUT forward (res=True): clamp(MLP(x) + x, 0, 1).

    x: channels-first intensities in [0, 1] — (B, 3, H, W), (B, 3, M) or
       (3, N), float32.  Channels-first keeps the wrapper to free reshapes
       (no HBM layout passes); channels-last callers: see nilut_pallas_points.
    params: (w1, b1, wh, bh, w5, b5) in PyTorch (out, in) layout:
       w1 (32,3), b1 (32,1), wh (3,32,32), bh (3,32,1), w5 (3,32), b5 (3,1).
    mxu_dtype: MXU operand dtype.  Keep bf16 on *all* generations (f32 MXU
       operands are multi-pass and ~3x slower, even on v5e); f32 is only
       useful for exact-math testing.
    elem_dtype: dtype of the bias/ReLU/tanh chain.  None -> bf16 on chips with
       a bf16 VPU/EUP (v6e/v7x), f32 otherwise.  Residual/clamp always f32.
    """
    if x.ndim == 2:                                     # (3, N)
        xb = x[None]
    elif x.ndim == 3:                                   # (B, 3, M)
        xb = x
    elif x.ndim == 4:                                   # (B, 3, H, W) -> (B, 3, HW): free reshape
        xb = x.reshape(x.shape[0], x.shape[1], -1)
    else:
        raise ValueError(f"unsupported input rank {x.ndim}")
    if xb.shape[1] != IN_F:
        raise ValueError("expected channels-first input with 3 channels")

    B, _, M = xb.shape
    kind = _device_kind()
    if elem_dtype is None:
        old_gen = any(v in kind for v in ("v2", "v3", "v4", "v5"))
        elem_dtype = jnp.float32 if old_gen else jnp.bfloat16

    tm, chunk = _choose_tiles(M, tm, chunk, B, kind)
    n_blk = pl.cdiv(M, tm)

    w1, b1, wh, bh, w5, b5 = params
    w1c = w1.astype(mxu_dtype)
    whc = wh.astype(mxu_dtype)
    w5c = w5.astype(mxu_dtype)
    b1e = b1.astype(elem_dtype)
    bhe = bh.astype(elem_dtype)
    b5f = b5.astype(jnp.float32)

    flops_per_pt = 2 * (IN_F * HID + HIDDEN_LAYERS * HID * HID + HID * OUT_F)
    weight_bytes = sum(int(a.size) * a.dtype.itemsize
                       for a in (w1c, b1e, whc, bhe, w5c, b5f))
    padded_pts = B * n_blk * tm
    cost = pl.CostEstimate(
        flops=flops_per_pt * B * M,
        transcendentals=HIDDEN_LAYERS * HID * B * M,
        # (3, tm) f32 tiles are sublane-padded to 8 rows in HBM tiling & VMEM,
        # so report the padded I/O figure (8 rows in + 8 rows out, 4 B each).
        bytes_accessed=2 * 8 * 4 * padded_pts + weight_bytes,
    )

    kernel = functools.partial(_nilut_kernel, chunk=chunk, elem_dtype=elem_dtype)
    const2 = lambda b, i: (0, 0)
    const3 = lambda b, i: (0, 0, 0)

    out = pl.pallas_call(
        kernel,
        out_shape=jax.ShapeDtypeStruct((B, OUT_F, M), x.dtype),
        grid_spec=pltpu.PrefetchScalarGridSpec(
            num_scalar_prefetch=0,
            grid=(B, n_blk),
            in_specs=[
                pl.BlockSpec((None, IN_F, tm), lambda b, i: (b, 0, i)),  # x tile
                pl.BlockSpec(w1c.shape, const2),        # resident weights/biases
                pl.BlockSpec(b1e.shape, const2),
                pl.BlockSpec(whc.shape, const3),
                pl.BlockSpec(bhe.shape, const3),
                pl.BlockSpec(w5c.shape, const2),
                pl.BlockSpec(b5f.shape, const2),
            ],
            out_specs=pl.BlockSpec((None, OUT_F, tm), lambda b, i: (b, 0, i)),
        ),
        compiler_params=pltpu.CompilerParams(
            dimension_semantics=("parallel", "parallel")),
        cost_estimate=cost,
    )(xb, w1c, b1e, whc, bhe, w5c, b5f)

    return out.reshape(x.shape)


def nilut_pallas_points(x_points, params, **kw):
    """Channels-last convenience path: x_points (..., 3) like the PyTorch
    module.  NOTE: this re-introduces two full HBM transpose passes around the
    kernel; prefer feeding channels-first via nilut_pallas (or fuse the
    permute into the producer/consumer)."""
    lead = x_points.shape[:-1]
    x_cf = x_points.reshape(-1, IN_F).T
    out = nilut_pallas(x_cf, params, **kw)
    return out.T.reshape(*lead, IN_F)


def init_nilut_params(key):
    """Deterministic PyTorch-Linear-style init U(-1/sqrt(fan_in), +1/sqrt(fan_in)).
    Weights kept in PyTorch (out, in) layout; hidden layers stacked."""
    def linear(k, fan_in, fan_out):
        kw, kb = jax.random.split(k)
        bound = 1.0 / math.sqrt(fan_in)
        w = jax.random.uniform(kw, (fan_out, fan_in), jnp.float32,
                               minval=-bound, maxval=bound)
        b = jax.random.uniform(kb, (fan_out, 1), jnp.float32,
                               minval=-bound, maxval=bound)
        return w, b

    keys = jax.random.split(key, 2 + HIDDEN_LAYERS)
    w1, b1 = linear(keys[0], IN_F, HID)
    whs, bhs = zip(*[linear(keys[1 + l], HID, HID)
                     for l in range(HIDDEN_LAYERS)])
    wh = jnp.stack(whs)          # (3, 32, 32)
    bh = jnp.stack(bhs)          # (3, 32, 1)
    w5, b5 = linear(keys[-1], HID, OUT_F)
    return (w1, b1, wh, bh, w5, b5)


def nilut_reference(x_flat, params):
    """Pure-JAX f32 reference in the PyTorch (N, C) layout."""
    w1, b1, wh, bh, w5, b5 = params
    h = jnp.maximum(x_flat @ w1.T + b1[:, 0], 0.0)
    for l in range(HIDDEN_LAYERS):
        h = jnp.tanh(h @ wh[l].T + bh[l, :, 0])
    out = h @ w5.T + b5[:, 0]
    return jnp.clip(out + x_flat, 0.0, 1.0)


if __name__ == "__main__":
    key = jax.random.PRNGKey(0)
    key, kx = jax.random.split(key)

    # Small example: batch=2, 3 channels, 16x16 spatial, channels-first (NCHW),
    # intensities in [0, 1].
    B, H, W = 2, 16, 16
    x = jax.random.uniform(kx, (B, IN_F, H, W), jnp.float32)

    params = init_nilut_params(key)

    # Pure-JAX reference in the (N, 3) layout of the PyTorch module.
    x_flat = jnp.transpose(x, (0, 2, 3, 1)).reshape(-1, IN_F)
    ref = nilut_reference(x_flat, params)

    # 1) Exact-math path (f32 MXU operands + f32 elementwise) -- tight check.
    out_f32 = jax.block_until_ready(
        nilut_pallas(x, params, mxu_dtype=jnp.float32, elem_dtype=jnp.float32))
    assert out_f32.shape == x.shape
    got_f32 = jnp.transpose(out_f32, (0, 2, 3, 1)).reshape(-1, IN_F)
    assert jnp.allclose(got_f32, ref, atol=1e-4, rtol=1e-4), "f32 mismatch vs reference"

    # 2) Default fast path (bf16 MXU on all gens; elementwise dtype auto per chip).
    out = jax.block_until_ready(nilut_pallas(x, params))
    assert out.shape == x.shape
    got = jnp.transpose(out, (0, 2, 3, 1)).reshape(-1, IN_F)
    assert jnp.allclose(got, ref, atol=5e-2), "bf16 mismatch vs reference"

    print("KERNEL_OK")
</pallas_src>

<mosaic_0001>
module attributes {stable_mosaic.version = 11 : i64} {
  func.func @_nilut_kernel(%arg0: i32, %arg1: i32, %arg2: memref<1x3x256xf32, #tpu.memory_space<vmem>>, %arg3: memref<32x3xf32, #tpu.memory_space<vmem>>, %arg4: memref<32x1xf32, #tpu.memory_space<vmem>>, %arg5: memref<3x32x32xf32, #tpu.memory_space<vmem>>, %arg6: memref<3x32x1xf32, #tpu.memory_space<vmem>>, %arg7: memref<3x32xf32, #tpu.memory_space<vmem>>, %arg8: memref<3x1xf32, #tpu.memory_space<vmem>>, %arg9: memref<1x3x256xf32, #tpu.memory_space<vmem>>) attributes {dimension_semantics = [#tpu.dimension_semantics<parallel>, #tpu.dimension_semantics<parallel>], iteration_bounds = array<i64: 2, 1>, scalar_prefetch = 0 : i64, scratch_operands = 0 : i64, tpu.core_type = #tpu.core_type<tc>, window_params = [{transform_indices = @transform_0, window_bounds = array<i64: 1, 3, 256>}, {pipeline_mode = #tpu.pipeline_mode<synchronous>, transform_indices = @transform_1, window_bounds = array<i64: 32, 3>}, {pipeline_mode = #tpu.pipeline_mode<synchronous>, transform_indices = @transform_2, window_bounds = array<i64: 32, 1>}, {pipeline_mode = #tpu.pipeline_mode<synchronous>, transform_indices = @transform_3, window_bounds = array<i64: 3, 32, 32>}, {pipeline_mode = #tpu.pipeline_mode<synchronous>, transform_indices = @transform_4, window_bounds = array<i64: 3, 32, 1>}, {pipeline_mode = #tpu.pipeline_mode<synchronous>, transform_indices = @transform_5, window_bounds = array<i64: 3, 32>}, {pipeline_mode = #tpu.pipeline_mode<synchronous>, transform_indices = @transform_6, window_bounds = array<i64: 3, 1>}, {transform_indices = @transform_7, window_bounds = array<i64: 1, 3, 256>}]} {
    %c0 = arith.constant 0 : index
    %c0_0 = arith.constant 0 : index
    %0 = vector.load %arg3[%c0, %c0_0] : memref<32x3xf32, #tpu.memory_space<vmem>>, vector<32x3xf32>
    %c0_1 = arith.constant 0 : index
    %c0_2 = arith.constant 0 : index
    %c0_3 = arith.constant 0 : index
    %1 = vector.load %arg5[%c0_1, %c0_2, %c0_3] : memref<3x32x32xf32, #tpu.memory_space<vmem>>, vector<1x32x32xf32>
    %2 = vector.shape_cast %1 : vector<1x32x32xf32> to vector<32x32xf32>
    %c1 = arith.constant 1 : index
    %c0_4 = arith.constant 0 : index
    %c0_5 = arith.constant 0 : index
    %3 = vector.load %arg5[%c1, %c0_4, %c0_5] : memref<3x32x32xf32, #tpu.memory_space<vmem>>, vector<1x32x32xf32>
    %4 = vector.shape_cast %3 : vector<1x32x32xf32> to vector<32x32xf32>
    %c2 = arith.constant 2 : index
    %c0_6 = arith.constant 0 : index
    %c0_7 = arith.constant 0 : index
    %5 = vector.load %arg5[%c2, %c0_6, %c0_7] : memref<3x32x32xf32, #tpu.memory_space<vmem>>, vector<1x32x32xf32>
    %6 = vector.shape_cast %5 : vector<1x32x32xf32> to vector<32x32xf32>
    %c0_8 = arith.constant 0 : index
    %c0_9 = arith.constant 0 : index
    %7 = vector.load %arg7[%c0_8, %c0_9] : memref<3x32xf32, #tpu.memory_space<vmem>>, vector<3x32xf32>
    %c0_10 = arith.constant 0 : index
    %c0_11 = arith.constant 0 : index
    %c0_12 = arith.constant 0 : index
    %8 = vector.load %arg2[%c0_10, %c0_11, %c0_12] : memref<1x3x256xf32, #tpu.memory_space<vmem>>, vector<1x3x256xf32>
    %9 = vector.shape_cast %8 : vector<1x3x256xf32> to vector<3x256xf32>
    %cst = arith.constant dense<0.000000e+00> : vector<32x256xf32>
    %10 = tpu.matmul %0, %9, %cst {dimension_numbers = #tpu.dot_dimension_numbers<[1], [0], [0], [1], [0, 0, 1, 1], [], []>} : vector<32x3xf32>, vector<3x256xf32>, vector<32x256xf32> -> vector<32x256xf32>
    %c0_13 = arith.constant 0 : index
    %c0_14 = arith.constant 0 : index
    %11 = vector.load %arg4[%c0_13, %c0_14] : memref<32x1xf32, #tpu.memory_space<vmem>>, vector<32x1xf32>
    %12 = vector.broadcast %11 : vector<32x1xf32> to vector<32x256xf32>
    %13 = arith.addf %10, %12 : vector<32x256xf32>
    %cst_15 = arith.constant 0.000000e+00 : f32
    %14 = vector.broadcast %cst_15 : f32 to vector<32x256xf32>
    %15 = arith.maximumf %13, %14 : vector<32x256xf32>
    %cst_16 = arith.constant dense<0.000000e+00> : vector<32x256xf32>
    %16 = tpu.matmul %2, %15, %cst_16 {dimension_numbers = #tpu.dot_dimension_numbers<[1], [0], [0], [1], [0, 0, 1, 1], [], []>} : vector<32x32xf32>, vector<32x256xf32>, vector<32x256xf32> -> vector<32x256xf32>
    %c0_17 = arith.constant 0 : index
    %c0_18 = arith.constant 0 : index
    %c0_19 = arith.constant 0 : index
    %17 = vector.load %arg6[%c0_17, %c0_18, %c0_19] : memref<3x32x1xf32, #tpu.memory_space<vmem>>, vector<1x32x1xf32>
    %18 = vector.shape_cast %17 : vector<1x32x1xf32> to vector<32x1xf32>
    %19 = vector.broadcast %18 : vector<32x1xf32> to vector<32x256xf32>
    %20 = arith.addf %16, %19 : vector<32x256xf32>
    %21 = math.tanh %20 : vector<32x256xf32>
    %cst_20 = arith.constant dense<0.000000e+00> : vector<32x256xf32>
    %22 = tpu.matmul %4, %21, %cst_20 {dimension_numbers = #tpu.dot_dimension_numbers<[1], [0], [0], [1], [0, 0, 1, 1], [], []>} : vector<32x32xf32>, vector<32x256xf32>, vector<32x256xf32> -> vector<32x256xf32>
    %c1_21 = arith.constant 1 : index
    %c0_22 = arith.constant 0 : index
    %c0_23 = arith.constant 0 : index
    %23 = vector.load %arg6[%c1_21, %c0_22, %c0_23] : memref<3x32x1xf32, #tpu.memory_space<vmem>>, vector<1x32x1xf32>
    %24 = vector.shape_cast %23 : vector<1x32x1xf32> to vector<32x1xf32>
    %25 = vector.broadcast %24 : vector<32x1xf32> to vector<32x256xf32>
    %26 = arith.addf %22, %25 : vector<32x256xf32>
    %27 = math.tanh %26 : vector<32x256xf32>
    %cst_24 = arith.constant dense<0.000000e+00> : vector<32x256xf32>
    %28 = tpu.matmul %6, %27, %cst_24 {dimension_numbers = #tpu.dot_dimension_numbers<[1], [0], [0], [1], [0, 0, 1, 1], [], []>} : vector<32x32xf32>, vector<32x256xf32>, vector<32x256xf32> -> vector<32x256xf32>
    %c2_25 = arith.constant 2 : index
    %c0_26 = arith.constant 0 : index
    %c0_27 = arith.constant 0 : index
    %29 = vector.load %arg6[%c2_25, %c0_26, %c0_27] : memref<3x32x1xf32, #tpu.memory_space<vmem>>, vector<1x32x1xf32>
    %30 = vector.shape_cast %29 : vector<1x32x1xf32> to vector<32x1xf32>
    %31 = vector.broadcast %30 : vector<32x1xf32> to vector<32x256xf32>
    %32 = arith.addf %28, %31 : vector<32x256xf32>
    %33 = math.tanh %32 : vector<32x256xf32>
    %cst_28 = arith.constant dense<0.000000e+00> : vector<3x256xf32>
    %34 = tpu.matmul %7, %33, %cst_28 {dimension_numbers = #tpu.dot_dimension_numbers<[1], [0], [0], [1], [0, 0, 1, 1], [], []>} : vector<3x32xf32>, vector<32x256xf32>, vector<3x256xf32> -> vector<3x256xf32>
    %c0_29 = arith.constant 0 : index
    %c0_30 = arith.constant 0 : index
    %35 = vector.load %arg8[%c0_29, %c0_30] : memref<3x1xf32, #tpu.memory_space<vmem>>, vector<3x1xf32>
    %36 = vector.broadcast %35 : vector<3x1xf32> to vector<3x256xf32>
    %37 = arith.addf %34, %36 : vector<3x256xf32>
    %38 = arith.addf %37, %9 : vector<3x256xf32>
    %cst_31 = arith.constant 0.000000e+00 : f32
    %cst_32 = arith.constant 1.000000e+00 : f32
    %39 = vector.broadcast %cst_31 : f32 to vector<3x256xf32>
    %40 = arith.maximumf %39, %38 : vector<3x256xf32>
    %41 = vector.broadcast %cst_32 : f32 to vector<3x256xf32>
    %42 = arith.minimumf %41, %40 : vector<3x256xf32>
    %c0_33 = arith.constant 0 : index
    %c0_34 = arith.constant 0 : index
    %c0_35 = arith.constant 0 : index
    %43 = vector.load %arg9[%c0_33, %c0_34, %c0_35] : memref<1x3x256xf32, #tpu.memory_space<vmem>>, vector<1x3x256xf32>
    %44 = vector.shape_cast %43 : vector<1x3x256xf32> to vector<3x256xf32>
    %45 = vector.shape_cast %42 : vector<3x256xf32> to vector<1x3x256xf32>
    tpu.vector_store %arg9[%c0_33, %c0_34, %c0_35], %45 {strides = array<i32>} : memref<1x3x256xf32, #tpu.memory_space<vmem>>, vector<1x3x256xf32>,
    return
  }
  func.func @transform_0(%arg0: i32, %arg1: i32) -> (i32, i32, i32) {
    %c0_i32 = arith.constant 0 : i32
    %c0_i32_0 = arith.constant 0 : i32
    return %arg0, %c0_i32, %arg1 : i32, i32, i32
  }
  func.func @transform_1(%arg0: i32, %arg1: i32) -> (i32, i32) {
    %c0_i32 = arith.constant 0 : i32
    %c0_i32_0 = arith.constant 0 : i32
    %c0_i32_1 = arith.constant 0 : i32
    return %c0_i32, %c0_i32_0 : i32, i32
  }
  func.func @transform_2(%arg0: i32, %arg1: i32) -> (i32, i32) {
    %c0_i32 = arith.constant 0 : i32
    %c0_i32_0 = arith.constant 0 : i32
    %c0_i32_1 = arith.constant 0 : i32
    return %c0_i32, %c0_i32_0 : i32, i32
  }
  func.func @transform_3(%arg0: i32, %arg1: i32) -> (i32, i32, i32) {
    %c0_i32 = arith.constant 0 : i32
    %c0_i32_0 = arith.constant 0 : i32
    %c0_i32_1 = arith.constant 0 : i32
    %c0_i32_2 = arith.constant 0 : i32
    return %c0_i32, %c0_i32_0, %c0_i32_1 : i32, i32, i32
  }
  func.func @transform_4(%arg0: i32, %arg1: i32) -> (i32, i32, i32) {
    %c0_i32 = arith.constant 0 : i32
    %c0_i32_0 = arith.constant 0 : i32
    %c0_i32_1 = arith.constant 0 : i32
    %c0_i32_2 = arith.constant 0 : i32
    return %c0_i32, %c0_i32_0, %c0_i32_1 : i32, i32, i32
  }
  func.func @transform_5(%arg0: i32, %arg1: i32) -> (i32, i32) {
    %c0_i32 = arith.constant 0 : i32
    %c0_i32_0 = arith.constant 0 : i32
    %c0_i32_1 = arith.constant 0 : i32
    return %c0_i32, %c0_i32_0 : i32, i32
  }
  func.func @transform_6(%arg0: i32, %arg1: i32) -> (i32, i32) {
    %c0_i32 = arith.constant 0 : i32
    %c0_i32_0 = arith.constant 0 : i32
    %c0_i32_1 = arith.constant 0 : i32
    return %c0_i32, %c0_i32_0 : i32, i32
  }
  func.func @transform_7(%arg0: i32, %arg1: i32) -> (i32, i32, i32) {
    %c0_i32 = arith.constant 0 : i32
    %c0_i32_0 = arith.constant 0 : i32
    return %arg0, %c0_i32, %arg1 : i32, i32, i32
  }
}

</mosaic_0001>

<bundles_post_ra>
// kernel: tpu_custom_call.1
= control target key start
LH: loop header
LB: loop body
LE: loop exit
PB: predicated region body
PF: predicated region fallthrough
CT: control target
= control target key end

     0   :  { %s1283_s24 = smov 0   ;;  %s1285_s25 = smov 0   ;;  %s1469_s0 = inlined_call_operand.vmem [shape: f32[2,3,256], index: 0, kind: input, shape index: {}]   ;;  %s1470_s1 = inlined_call_operand.vmem [shape: f32[32,3], index: 1, kind: input, shape index: {}]   ;;  %s1471_s2 = inlined_call_operand.vmem [shape: f32[32,1], index: 2, kind: input, shape index: {}]   ;;  %s1472_s3 = inlined_call_operand.vmem [shape: f32[3,32,32], index: 3, kind: input, shape index: {}]   ;;  %s1473_s4 = inlined_call_operand.vmem [shape: f32[3,32,1], index: 4, kind: input, shape index: {}]   ;;  %s1474_s5 = inlined_call_operand.vmem [shape: f32[3,32], index: 5, kind: input, shape index: {}]   ;;  %s1475_s6 = inlined_call_operand.vmem [shape: f32[3,1], index: 6, kind: input, shape index: {}]   ;;  %s1476_s7 = inlined_call_operand.vmem [shape: f32[2,3,256], index: 7, kind: output, shape index: {}]  }
   0x1   :  { %s1287_s26 = smov 0  }
   0x2 LB: > { %s29_s27 = sadd.s32 1, %s1235_s25  ;;  %p1064_p0 = scmp.ge.s32.totalorder %s1239_s26, 1  ;;  %s1239_s26 = sphi %s1287_s26, %s17_s26   ;;  %s1235_s25 = sphi %s1285_s25, %s1478_s25   ;;  %s1231_s24 = sphi %s1283_s24, %s1477_s24  }
   0x3   : > { %p31_p1 = scmp.ge.s32.totalorder %s29_s27, 2  ;;  %p258_p2 = scmp.lt.s32.totalorder %s1239_s26, 3 }
   0x5   : > { %s1480_s27 = smov (%p31_p1, %s29_s27), 0  ;;  %p259_p3 = pnand %p1064_p0, %p258_p2 }
   0x6   : > { %p299_p4 = scmp.lt.s32.totalorder (!%p259_p3), %s1231_s24, 1  ;;  %v1241_v0 = vmov (!%p259_p3), 0.0   ;;  %v338_v1 = vld [vmem:[%s1471_s2] sm:$0xff] (!%p259_p3)  ;;  %v1242_v2 = vmov (!%p259_p3), 0   ;;  %v340_v3 = vld [vmem:[%s1471_s2 + $0x10] sm:$0xff] (!%p259_p3)  ;;  %v339_v4 = vld [vmem:[%s1471_s2 + $0x8] sm:$0xff] (!%p259_p3) }
   0x7   : > { %262 = sbr.rel (%p259_p3) target bundleno = 1213 (0x4bd), region = 48  ;;  %446 = vmatprep.mubr.f32.mxu0 (!%p259_p3), %v1241_v0  ;;  %580 = vmatprep.mubr.f32.mxu1 (!%p259_p3), %v1241_v0  ;;  %v341_v5 = vld [vmem:[%s1471_s2 + $0x18] sm:$0xff] (!%p259_p3)  ;;  %vm377_vm0 = vcmask (!%p259_p3), 1042432   ;;  %v318_v8 = vld [vmem:[%s1470_s1] sm:$0xff] (!%p259_p3)  ;;  %vm364_vm1 = vcmask (!%p259_p3), 23552   ;;  %v480_v10 = vld [vmem:[%s1473_s4 + $0x8] sm:$0xff] (!%p259_p3) }
   0x8   : > { %1166 = vset.pattern.permute.xlu0 (!%p259_p3), %v1242_v2  ;;  %1167 = vset.pattern.permute.xlu1 (!%p259_p3), %v1242_v2  ;;  %v479_v9 = vld [vmem:[%s1473_s4] sm:$0xff] (!%p259_p3)  ;;  %v319_v11 = vld [vmem:[%s1470_s1 + $0x8] sm:$0xff] (!%p259_p3)  ;;  %v481_v12 = vld [vmem:[%s1473_s4 + $0x10] sm:$0xff] (!%p259_p3)  ;;  %vm503_vm2 = vcmask (!%p259_p3), 261120  }
   0x9   : > { %344 = vperm.xlu0 (!%p259_p3), %1166, %v338_v1   ;;  %354 = vperm.xlu1 (!%p259_p3), %1167, %v340_v3   ;;  %v482_v13 = vld [vmem:[%s1473_s4 + $0x18] sm:$0xff] (!%p259_p3)  ;;  %v320_v14 = vld [vmem:[%s1470_s1 + $0x10] sm:$0xff] (!%p259_p3)  ;;  %v1087_v15 = vld [vmem:[%s1473_s4 + $0x20] sm:$0xff] (!%p259_p3) }
   0xa   : > { %v1088_v16 = vld [vmem:[%s1473_s4 + $0x28] sm:$0xff] (!%p259_p3)  ;;  %v321_v17 = vld [vmem:[%s1470_s1 + $0x18] sm:$0xff] (!%p259_p3)  ;;  %v1089_v18 = vld [vmem:[%s1473_s4 + $0x30] sm:$0xff] (!%p259_p3) }
   0xb   : > { %v1090_v19 = vld [vmem:[%s1473_s4 + $0x38] sm:$0xff] (!%p259_p3)  ;;  %v1095_v20 = vld [vmem:[%s1473_s4 + $0x40] sm:$0xff] (!%p259_p3)  ;;  %v1096_v21 = vld [vmem:[%s1473_s4 + $0x48] sm:$0xff] (!%p259_p3) }
   0xc   : > { %v1097_v22 = vld [vmem:[%s1473_s4 + $0x50] sm:$0xff] (!%p259_p3)  ;;  %v1098_v23 = vld [vmem:[%s1473_s4 + $0x58] sm:$0xff] (!%p259_p3)  ;;  %v881_v24 = vld [vmem:[%s1475_s6] sm:$0x7] (!%p259_p3) }
   0xd   : > { %349 = vperm.xlu0 (!%p259_p3), %1166, %v339_v4   ;;  %359 = vperm.xlu1 (!%p259_p3), %1167, %v341_v5   ;;  %v322_v57 = vld [vmem:[%s1472_s3] sm:$0xff] (!%p259_p3)  ;;  %v323_v58 = vld [vmem:[%s1472_s3 + $0x8] sm:$0xff] (!%p259_p3)  ;;  %v324_v59 = vld [vmem:[%s1472_s3 + $0x10] sm:$0xff] (!%p259_p3) }
   0xe   : > { %s1482_s24 = smov (!%p299_p4, %s1231_s24), 1  ;;  %v325_v60 = vld [vmem:[%s1472_s3 + $0x18] sm:$0xff] }
   0xf   : > { %s1106_s9 = sshll.u32 %s1482_s24, 3 }
  0x10   : > { %s306_s16 = scalar_lea.vmem %s1469_s0, %s1106_s9  ;;  %s316_s29 = scalar_lea.vmem %s1476_s7, %s1106_s9 }
  0x11   : > { %v1323_v6 = vld [vmem:[%s306_s16] sm:$0x77]  ;;  %485 = vperm.xlu0 %1166, %v479_v9   ;;  %490 = vperm.xlu1 %1167, %v480_v10  }
  0x12   : > { %v1327_v7 = vcombine.high %v1323_v6, %v1323_v6 }
  0x14   : > { %1077 = vmatprep.subr.msk.mxu0 %vm377_vm0, %v1327_v7 }
  0x15   : > { %1078 = vmatpush1.msk.msra.mxu0 %vm377_vm0, %v1323_v6  ;;  %495 = vperm.xlu0 %1166, %v481_v12  }
  0x16   : > { %1079 = vmatmul.mubr.msk.f32.vlgmr.msra.gmra.mrb[0].mxu0 %vm364_vm1, %v318_v8  ;;  %500 = vperm.xlu1 %1167, %v482_v13  }
  0x17   : > { %452 = vmatprep.mubr.f32.mxu0 %v1241_v0 }
  0x19   : > { %620 = vperm.xlu0 %1166, %v1087_v15  }
  0x1a   : > { %1080 = vmatmul.mubr.msk.f32.gmra.mrb[2].mxu0 %vm364_vm1, %v319_v11  ;;  %625 = vperm.xlu1 %1167, %v1088_v16  }
  0x1b   : > { %458 = vmatprep.mubr.f32.mxu0 %v1241_v0 }
  0x1d   : > { %630 = vperm.xlu0 %1166, %v1089_v18  }
  0x1e   : > { %1081 = vmatmul.mubr.msk.f32.gmra.mrb[4].mxu0 %vm364_vm1, %v320_v14  ;;  %635 = vperm.xlu1 %1167, %v1090_v19  }
  0x1f   : > { %464 = vmatprep.mubr.f32.mxu0 %v1241_v0 }
  0x21   : > { %754 = vperm.xlu0 %1166, %v1095_v20  }
  0x22   : > { %1082 = vmatmul.mubr.msk.f32.gmra.mrb[6].mxu0 %vm364_vm1, %v321_v17  ;;  %759 = vperm.xlu1 %1167, %v1096_v21  }
  0x23   : > { %714 = vmatprep.mubr.f32.mxu0 %v1241_v0 }
  0x25   : > { %764 = vperm.xlu0 %1166, %v1097_v22  }
  0x26   : > { %769 = vperm.xlu1 %1167, %v1098_v23  }
  0x29   : > { %884 = vperm.xlu0 %1166, %v881_v24  }
  0x88   : > { %v345_v25 = vpop.permute.xlu0 %344  ;;  %v355_v34 = vpop.permute.xlu1 %354 }
  0x8c   : > { %v350_v29 = vpop.permute.xlu0 %349  ;;  %v360_v45 = vpop.permute.xlu1 %359 }
  0x90   : > { %v486_v61 = vpop.permute.xlu0 %485  ;;  %v491_v3 = vpop.permute.xlu1 %490 }
  0x94   : > { %v496_v10 = vpop.permute.xlu0 %495 }
  0x95   : > { %v501_v15 = vpop.permute.xlu1 %500 }
  0xe9   : > { %v448_v26 = vpop.f32.mrb[0].mxu0 }
  0xea   : > { %v450_v27 = vpop.f32.mrb[1].mxu0  ;;  %v449_v28 = vadd.f32 %v448_v26, %v345_v25 }
  0xeb   : > { %v451_v30 = vadd.f32 %v450_v27, %v345_v25 }
  0xec   : > { %v471_v36 = vmax.f32 %v449_v28, 0.0 }
  0xed   : > { %v454_v31 = vpop.f32.mrb[2].mxu0  ;;  %v472_v38 = vmax.f32 %v451_v30, 0.0 }
  0xee   : > { %v455_v32 = vadd.f32 %v454_v31, %v350_v29  ;;  %v456_v33 = vpop.f32.mrb[3].mxu0 }
  0xef   : > { %v457_v35 = vadd.f32 %v456_v33, %v350_v29  ;;  %v1070_v33 = vld [vmem:[%s1472_s3 + $0x28] sm:$0xff] }
  0xf0   : > { %v473_v37 = vmax.f32 %v455_v32, 0.0  ;;  %v1069_v32 = vld [vmem:[%s1472_s3 + $0x20] sm:$0xff] }
  0xf1   : > { %v474_v39 = vmax.f32 %v457_v35, 0.0  ;;  %v460_v40 = vpop.f32.mrb[4].mxu0  ;;  %v1072_v35 = vld [vmem:[%s1472_s3 + $0x38] sm:$0xff] }
  0xf2   : > { %v462_v41 = vpop.f32.mrb[5].mxu0  ;;  %v1110_v42 = vpack.c.bf16 %v473_v37, %v471_v36  ;;  %v461_v44 = vadd.f32 %v460_v40, %v355_v34  ;;  %v621_v36 = vpop.permute.xlu0 %620 }
  0xf3   : > { %v1108_v43 = vpack.c.bf16 %v474_v39, %v472_v38  ;;  %v463_v46 = vadd.f32 %v462_v41, %v355_v34  ;;  %v1071_v34 = vld [vmem:[%s1472_s3 + $0x30] sm:$0xff]  ;;  %v626_v41 = vpop.permute.xlu1 %625 }
  0xf4   : > { %v475_v51 = vmax.f32 %v461_v44, 0.0 }
  0xf5   : > { %v466_v47 = vpop.f32.mrb[6].mxu0  ;;  %1109 = vmatprep.subr.bf16.mxu1 %v1108_v43  ;;  %v476_v53 = vmax.f32 %v463_v46, 0.0 }
  0xf6   : > { %v467_v48 = vadd.f32 %v466_v47, %v360_v45  ;;  %v468_v49 = vpop.f32.mrb[7].mxu0  ;;  %1111 = vmatpush1.bf16.msra.mxu1 %v1110_v42  ;;  %v631_v46 = vpop.permute.xlu0 %630 }
  0xf7   : > { %v469_v50 = vadd.f32 %v468_v49, %v360_v45 }
  0xf8   : > { %v477_v52 = vmax.f32 %v467_v48, 0.0 }
  0xf9   : > { %v478_v54 = vmax.f32 %v469_v50, 0.0 }
  0xfa   : > { %v1114_v55 = vpack.c.bf16 %v477_v52, %v475_v51  ;;  %v636_v51 = vpop.permute.xlu1 %635 }
  0xfb   : > { %v1112_v56 = vpack.c.bf16 %v478_v54, %v476_v53 }
  0xfd   : > { %1113 = vmatprep.subr.bf16.mxu1 %v1112_v56 }
  0xfe   : > { %1115 = vmatpush1.bf16.msra.mxu1 %v1114_v55 }
 0x101   : > { %1083 = vmatmul.mubr.msk.f32.vlgmr.msra.gmra.mrb[0].mxu1 %vm503_vm2, %v322_v57 }
 0x102   : > { %586 = vmatprep.mubr.f32.mxu1 %v1241_v0 }
 0x105   : > { %1084 = vmatmul.mubr.msk.f32.gmra.mrb[2].mxu1 %vm503_vm2, %v323_v58 }
 0x106   : > { %592 = vmatprep.mubr.f32.mxu1 %v1241_v0 }
 0x109   : > { %1085 = vmatmul.mubr.msk.f32.gmra.mrb[4].mxu1 %vm503_vm2, %v324_v59 }
 0x10a   : > { %598 = vmatprep.mubr.f32.mxu1 %v1241_v0 }
 0x10d   : > { %1086 = vmatmul.mubr.msk.f32.gmra.mrb[6].mxu1 %vm503_vm2, %v325_v60 }
 0x10e   : > { %848 = vmatprep.mubr.f32.mxu1 %v1241_v0 }
 0x1d4   : > { %v582_v62 = vpop.f32.mrb[0].mxu1 }
 0x1d5   : > { %v583_v63 = vadd.f32 %v582_v62, %v486_v61  ;;  %v584_v1 = vpop.f32.mrb[1].mxu1 }
 0x1d6   : > { %v585_v2 = vadd.f32 %v584_v1, %v486_v61 }
 0x1d7   : > { %1169 = vtanh.f32 %v583_v63 }
 0x1d8   : > { %v588_v4 = vpop.f32.mrb[2].mxu1  ;;  %1171 = vtanh.f32 %v585_v2 }
 0x1d9   : > { %v589_v5 = vadd.f32 %v588_v4, %v491_v3  ;;  %v590_v8 = vpop.f32.mrb[3].mxu1 }
 0x1da   : > { %v591_v9 = vadd.f32 %v590_v8, %v491_v3  ;;  %v1074_v8 = vld [vmem:[%s1472_s3 + $0x48] sm:$0xff] }
 0x1db   : > { %1173 = vtanh.f32 %v589_v5  ;;  %v1073_v5 = vld [vmem:[%s1472_s3 + $0x40] sm:$0xff] }
 0x1dc   : > { %1175 = vtanh.f32 %v591_v9  ;;  %v594_v11 = vpop.f32.mrb[4].mxu1  ;;  %v1075_v9 = vld [vmem:[%s1472_s3 + $0x50] sm:$0xff] }
 0x1dd   : > { %v595_v12 = vadd.f32 %v594_v11, %v496_v10  ;;  %v596_v13 = vpop.f32.mrb[5].mxu1  ;;  %v755_v11 = vpop.permute.xlu0 %754 }
 0x1de   : > { %v597_v14 = vadd.f32 %v596_v13, %v496_v10  ;;  %v1076_v10 = vld [vmem:[%s1472_s3 + $0x58] sm:$0xff] }
 0x1df   : > { %1177 = vtanh.f32 %v595_v12 }
 0x1e0   : > { %v600_v16 = vpop.f32.mrb[6].mxu1  ;;  %1179 = vtanh.f32 %v597_v14 }
 0x1e1   : > { %v601_v17 = vadd.f32 %v600_v16, %v501_v15  ;;  %v602_v18 = vpop.f32.mrb[7].mxu1  ;;  %v1170_v20 = vpop.eup %1169 }
 0x1e2   : > { %v603_v19 = vadd.f32 %v602_v18, %v501_v15  ;;  %v1172_v21 = vpop.eup %1171  ;;  %v760_v16 = vpop.permute.xlu1 %759 }
 0x1e3   : > { %1181 = vtanh.f32 %v601_v17 }
 0x1e4   : > { %1183 = vtanh.f32 %v603_v19 }
 0x1e5   : > { %v1174_v22 = vpop.eup %1173 }
 0x1e6   : > { %v1176_v23 = vpop.eup %1175  ;;  %v1118_v24 = vpack.c.bf16 %v1174_v22, %v1170_v20 }
 0x1e7   : > { %v1116_v25 = vpack.c.bf16 %v1176_v23, %v1172_v21 }
 0x1e9   : > { %1117 = vmatprep.subr.bf16.mxu0 %v1116_v25  ;;  %v1178_v26 = vpop.eup %1177  ;;  %v770_v25 = vpop.permute.xlu1 %769 }
 0x1ea   : > { %1119 = vmatpush1.bf16.msra.mxu0 %v1118_v24  ;;  %v1180_v27 = vpop.eup %1179 }
 0x1ed   : > { %v1182_v28 = vpop.eup %1181 }
 0x1ee   : > { %v1184_v29 = vpop.eup %1183  ;;  %v1122_v30 = vpack.c.bf16 %v1182_v28, %v1178_v26 }
 0x1ef   : > { %v1120_v31 = vpack.c.bf16 %v1184_v29, %v1180_v27 }
 0x1f1   : > { %1121 = vmatprep.subr.bf16.mxu0 %v1120_v31 }
 0x1f2   : > { %1123 = vmatpush1.bf16.msra.mxu0 %v1122_v30 }
 0x1f5   : > { %1091 = vmatmul.mubr.msk.f32.vlgmr.msra.gmra.mrb[8].mxu0 %vm503_vm2, %v1069_v32 }
 0x1f6   : > { %720 = vmatprep.mubr.f32.mxu0 %v1241_v0 }
 0x1f9   : > { %1092 = vmatmul.mubr.msk.f32.gmra.mrb[10].mxu0 %vm503_vm2, %v1070_v33 }
 0x1fa   : > { %726 = vmatprep.mubr.f32.mxu0 %v1241_v0 }
 0x1fd   : > { %1093 = vmatmul.mubr.msk.f32.gmra.mrb[12].mxu0 %vm503_vm2, %v1071_v34 }
 0x1fe   : > { %732 = vmatprep.mubr.f32.mxu0 %v1241_v0 }
 0x201   : > { %1094 = vmatmul.mubr.msk.f32.gmra.mrb[14].mxu0 %vm503_vm2, %v1072_v35 }
 0x202   : > { %954 = vmatprep.mubr.f32.mxu0 %v1241_v0 }
 0x2c8   : > { %v716_v37 = vpop.f32.mrb[8].mxu0 }
 0x2c9   : > { %v717_v38 = vadd.f32 %v716_v37, %v621_v36  ;;  %v718_v39 = vpop.f32.mrb[9].mxu0 }
 0x2ca   : > { %v719_v40 = vadd.f32 %v718_v39, %v621_v36 }
 0x2cb   : > { %1185 = vtanh.f32 %v717_v38 }
 0x2cc   : > { %v722_v42 = vpop.f32.mrb[10].mxu0  ;;  %1187 = vtanh.f32 %v719_v40 }
 0x2cd   : > { %v723_v43 = vadd.f32 %v722_v42, %v626_v41  ;;  %v724_v44 = vpop.f32.mrb[11].mxu0  ;;  %v336_v42 = vld [vmem:[%s1474_s5] sm:$0x7] }
 0x2ce   : > { %v725_v45 = vadd.f32 %v724_v44, %v626_v41 }
 0x2cf   : > { %1189 = vtanh.f32 %v723_v43 }
 0x2d0   : > { %1191 = vtanh.f32 %v725_v45  ;;  %v728_v47 = vpop.f32.mrb[12].mxu0 }
 0x2d1   : > { %v729_v48 = vadd.f32 %v728_v47, %v631_v46  ;;  %v730_v49 = vpop.f32.mrb[13].mxu0 }
 0x2d2   : > { %v731_v50 = vadd.f32 %v730_v49, %v631_v46 }
 0x2d3   : > { %1193 = vtanh.f32 %v729_v48 }
 0x2d4   : > { %v734_v52 = vpop.f32.mrb[14].mxu0  ;;  %1195 = vtanh.f32 %v731_v50 }
 0x2d5   : > { %v735_v53 = vadd.f32 %v734_v52, %v636_v51  ;;  %v736_v54 = vpop.f32.mrb[15].mxu0  ;;  %v1186_v56 = vpop.eup %1185 }
 0x2d6   : > { %v737_v55 = vadd.f32 %v736_v54, %v636_v51  ;;  %v1188_v57 = vpop.eup %1187 }
 0x2d7   : > { %1197 = vtanh.f32 %v735_v53 }
 0x2d8   : > { %1199 = vtanh.f32 %v737_v55 }
 0x2d9   : > { %v1190_v58 = vpop.eup %1189 }
 0x2da   : > { %v1192_v59 = vpop.eup %1191  ;;  %v1126_v60 = vpack.c.bf16 %v1190_v58, %v1186_v56 }
 0x2db   : > { %v1124_v61 = vpack.c.bf16 %v1192_v59, %v1188_v57 }
 0x2dd   : > { %1125 = vmatprep.subr.bf16.mxu1 %v1124_v61  ;;  %v1194_v62 = vpop.eup %1193 }
 0x2de   : > { %1127 = vmatpush1.bf16.msra.mxu1 %v1126_v60  ;;  %v1196_v63 = vpop.eup %1195 }
 0x2e1   : > { %v1198_v1 = vpop.eup %1197 }
 0x2e2   : > { %v1200_v2 = vpop.eup %1199  ;;  %v1130_v3 = vpack.c.bf16 %v1198_v1, %v1194_v62 }
 0x2e3   : > { %v1128_v4 = vpack.c.bf16 %v1200_v2, %v1196_v63 }
 0x2e5   : > { %1129 = vmatprep.subr.bf16.mxu1 %v1128_v4 }
 0x2e6   : > { %1131 = vmatpush1.bf16.msra.mxu1 %v1130_v3 }
 0x2e9   : > { %1099 = vmatmul.mubr.msk.f32.vlgmr.msra.gmra.mrb[8].mxu1 %vm503_vm2, %v1073_v5 }
 0x2ea   : > { %854 = vmatprep.mubr.f32.mxu1 %v1241_v0 }
 0x2ed   : > { %1100 = vmatmul.mubr.msk.f32.gmra.mrb[10].mxu1 %vm503_vm2, %v1074_v8 }
 0x2ee   : > { %860 = vmatprep.mubr.f32.mxu1 %v1241_v0 }
 0x2f1   : > { %1101 = vmatmul.mubr.msk.f32.gmra.mrb[12].mxu1 %vm503_vm2, %v1075_v9 }
 0x2f2   : > { %866 = vmatprep.mubr.f32.mxu1 %v1241_v0  ;;  %v765_v0 = vpop.permute.xlu0 %764 }
 0x2f5   : > { %1102 = vmatmul.mubr.msk.f32.gmra.mrb[14].mxu1 %vm503_vm2, %v1076_v10 }
 0x2f6   : > { %v885_v43 = vpop.permute.xlu0 %884 }
 0x3bc   : > { %v850_v12 = vpop.f32.mrb[8].mxu1 }
 0x3bd   : > { %v851_v13 = vadd.f32 %v850_v12, %v755_v11  ;;  %v852_v14 = vpop.f32.mrb[9].mxu1 }
 0x3be   : > { %v853_v15 = vadd.f32 %v852_v14, %v755_v11 }
 0x3bf   : > { %1201 = vtanh.f32 %v851_v13 }
 0x3c0   : > { %v856_v17 = vpop.f32.mrb[10].mxu1  ;;  %1203 = vtanh.f32 %v853_v15 }
 0x3c1   : > { %v857_v18 = vadd.f32 %v856_v17, %v760_v16  ;;  %v858_v19 = vpop.f32.mrb[11].mxu1 }
 0x3c2   : > { %v859_v20 = vadd.f32 %v858_v19, %v760_v16 }
 0x3c3   : > { %1205 = vtanh.f32 %v857_v18 }
 0x3c4   : > { %1207 = vtanh.f32 %v859_v20  ;;  %v862_v21 = vpop.f32.mrb[12].mxu1 }
 0x3c5   : > { %v863_v22 = vadd.f32 %v862_v21, %v765_v0  ;;  %v864_v23 = vpop.f32.mrb[13].mxu1 }
 0x3c6   : > { %v865_v24 = vadd.f32 %v864_v23, %v765_v0 }
 0x3c7   : > { %1209 = vtanh.f32 %v863_v22 }
 0x3c8   : > { %v868_v26 = vpop.f32.mrb[14].mxu1  ;;  %1211 = vtanh.f32 %v865_v24 }
 0x3c9   : > { %v869_v27 = vadd.f32 %v868_v26, %v770_v25  ;;  %v870_v28 = vpop.f32.mrb[15].mxu1  ;;  %v1202_v30 = vpop.eup %1201 }
 0x3ca   : > { %v871_v29 = vadd.f32 %v870_v28, %v770_v25  ;;  %v1204_v31 = vpop.eup %1203 }
 0x3cb   : > { %1213 = vtanh.f32 %v869_v27 }
 0x3cc   : > { %1215 = vtanh.f32 %v871_v29 }
 0x3cd   : > { %v1206_v32 = vpop.eup %1205 }
 0x3ce   : > { %v1208_v33 = vpop.eup %1207  ;;  %v1134_v34 = vpack.c.bf16 %v1206_v32, %v1202_v30 }
 0x3cf   : > { %v1132_v35 = vpack.c.bf16 %v1208_v33, %v1204_v31 }
 0x3d1   : > { %1133 = vmatprep.subr.bf16.mxu0 %v1132_v35  ;;  %v1210_v36 = vpop.eup %1209 }
 0x3d2   : > { %1135 = vmatpush1.bf16.msra.mxu0 %v1134_v34  ;;  %v1212_v37 = vpop.eup %1211 }
 0x3d5   : > { %v1214_v38 = vpop.eup %1213 }
 0x3d6   : > { %v1216_v39 = vpop.eup %1215  ;;  %v1138_v40 = vpack.c.bf16 %v1214_v38, %v1210_v36 }
 0x3d7   : > { %v1136_v41 = vpack.c.bf16 %v1216_v39, %v1212_v37 }
 0x3d9   : > { %1137 = vmatprep.subr.bf16.mxu0 %v1136_v41 }
 0x3da   : > { %1139 = vmatpush1.bf16.msra.mxu0 %v1138_v40 }
 0x3dd   : > { %1103 = vmatmul.mubr.msk.f32.vlgmr.msra.gmra.mrb[16].mxu0 %vm503_vm2, %v336_v42 }
 0x4b0   : > { %v956_v44 = vpop.f32.mrb[16].mxu0 }
 0x4b1   : > { %v957_v45 = vadd.f32 %v956_v44, %v885_v43  ;;  %v958_v46 = vpop.f32.mrb[17].mxu0 }
 0x4b2   : > { %v959_v47 = vadd.f32 %v958_v46, %v885_v43 }
 0x4b3   : > { %v962_v48 = vadd.f32 %v957_v45, %v1323_v6 }
 0x4b4   : > { %v963_v49 = vadd.f32 %v959_v47, %v1327_v7 }
 0x4b5   : > { %v964_v50 = vmax.f32 %v962_v48, 0.0 }
 0x4b6   : > { %v965_v51 = vmax.f32 %v963_v49, 0.0 }
 0x4b7   : > { %v966_v52 = vmin.f32 %v964_v50, 1.0 }
 0x4b8   : > { %v967_v53 = vmin.f32 %v965_v51, 1.0 }
 0x4ba   : > { %v970_v54 = vcombine.low %v966_v52, %v967_v53 }
 0x4bc   : > { %972 = vst [vmem:[%s316_s29] sm:$0x77] %v970_v54 }
 0x4bd PF: > { %s17_s26 = sadd.s32 1, %s1239_s26   ;;  %s1477_s24 = smov %s1235_s25 }
 0x4be   : > { %p14_p5 = scmp.ge.s32.totalorder %s17_s26, 4   ;;  %s1478_s25 = smov %s1480_s27 }
 0x4c0   :  { %16 = sbr.rel (!%p14_p5) target bundleno = 2 (0x2), region = 82 }

</bundles_post_ra>
